<compile_context>
chip_gen: v7x
topology: tpu7x:2x2x1
jax: 0.10.0
libtpu: 0.0.40
codegen_flags: <defaults>
</compile_context>

<pallas_src>
import jax
import jax.numpy as jnp
from jax.experimental import pallas as pl
from jax.experimental.pallas import tpu as pltpu


def _round_up(n, m):
    return ((n + m - 1) // m) * m


# Conservative per-call VMEM budget for the tiles (double-buffered x + out + W);
# comfortably inside v7x's 64 MiB physical VMEM and v5e's raised scoped limit.
_VMEM_TILE_BUDGET = 24 * 1024 * 1024


def _pick_block_batch(batch, d, c_pad, x_itemsize, w_itemsize, out_itemsize):
    """Largest power-of-two-ish batch tile (multiple of 8) that fits the budget."""
    w_resident = 2 * d * c_pad * w_itemsize + 2 * c_pad * 4  # W + bias (dbl-buffered)
    tb = 512
    while tb > 8:
        need = 2 * tb * d * x_itemsize + 2 * tb * c_pad * out_itemsize + w_resident
        if need <= _VMEM_TILE_BUDGET:
            break
        tb //= 2
    return max(8, min(tb, _round_up(batch, 8)))


def _lrsg_kernel(x_ref, w_ref, b_ref, o_ref):
    # MXU matmul with f32 accumulation; bias-add + sigmoid stay f32.
    logits = jnp.dot(x_ref[...], w_ref[...], preferred_element_type=jnp.float32)
    logits = logits + b_ref[...]
    # sigmoid = 1 / (1 + exp(-z)): exp and the approx reciprocal both land on
    # the (otherwise idle) EUP slot -> essentially free next to the x stream.
    o_ref[...] = pl.reciprocal(1.0 + jnp.exp(-logits), approx=True).astype(o_ref.dtype)


def lrsg_forward(x, weight, bias, *, block_batch=None, compute_dtype=jnp.bfloat16):
    """LRSG forward: sigmoid(x @ weight.T + bias).

    x: (B, D); weight: (C, D) (nn.Linear layout); bias: (C,).
    Returns (B, C) in x.dtype.
    """
    B, D = x.shape
    C, D2 = weight.shape
    assert D == D2 and bias.shape == (C,)
    out_dtype = x.dtype
    out_itemsize = jnp.dtype(out_dtype).itemsize

    # Lane-dense class dimension (multiple of 128) for unmasked MXU N / stores.
    Cp = _round_up(max(C, 1), 128)

    x_c = x.astype(compute_dtype)
    w_t = jnp.zeros((D, Cp), compute_dtype).at[:, :C].set(weight.T.astype(compute_dtype))
    b2d = jnp.zeros((1, Cp), jnp.float32).at[:, :C].set(bias.astype(jnp.float32))

    tb = block_batch or _pick_block_batch(
        B, D, Cp, jnp.dtype(compute_dtype).itemsize, jnp.dtype(compute_dtype).itemsize,
        out_itemsize)
    assert tb % 8 == 0, "block_batch must be a multiple of 8 (f32 sublane)"

    # Pad the batch so arbitrary B is accepted (padded rows are sliced off).
    Bp = _round_up(B, tb)
    if Bp != B:
        x_c = jnp.pad(x_c, ((0, Bp - B), (0, 0)))

    cost = pl.CostEstimate(
        flops=2 * Bp * D * Cp,
        transcendentals=2 * Bp * Cp,  # exp + reciprocal per output element
        bytes_accessed=(Bp * D * jnp.dtype(compute_dtype).itemsize
                        + D * Cp * jnp.dtype(compute_dtype).itemsize
                        + Cp * 4
                        + Bp * Cp * out_itemsize),
    )

    out = pl.pallas_call(
        _lrsg_kernel,
        out_shape=jax.ShapeDtypeStruct((Bp, Cp), out_dtype),
        grid_spec=pltpu.PrefetchScalarGridSpec(
            num_scalar_prefetch=0,
            grid=(Bp // tb,),
            in_specs=[
                pl.BlockSpec((tb, D), lambda i: (i, 0)),   # x tile (streamed)
                pl.BlockSpec((D, Cp), lambda i: (0, 0)),   # W^T (resident)
                pl.BlockSpec((1, Cp), lambda i: (0, 0)),   # bias (resident)
            ],
            out_specs=pl.BlockSpec((tb, Cp), lambda i: (i, 0)),
        ),
        compiler_params=pltpu.CompilerParams(
            dimension_semantics=("parallel",),          # megacore-shardable on v7x
            vmem_limit_bytes=48 * 1024 * 1024,          # > v5e's 16 MiB default, < v7x physical
        ),
        cost_estimate=cost,
    )(x_c, w_t, b2d)

    return out[:B, :C]


if __name__ == "__main__":
    # Small but pipeline-exercising shapes consistent with the module:
    # dimension=32, num_class=1, batch=1024 (grid of 2 x 512-row tiles).
    B, D, C = 1024, 32, 1
    key = jax.random.PRNGKey(0)
    kx, kw, kb = jax.random.split(key, 3)

    x = jax.random.normal(kx, (B, D), dtype=jnp.float32)
    weight = jax.random.normal(kw, (C, D), dtype=jnp.float32) * 0.1   # nn.Linear weight (C, D)
    bias = jax.random.normal(kb, (C,), dtype=jnp.float32) * 0.1       # nn.Linear bias (C,)

    ref = jax.nn.sigmoid(x @ weight.T + bias)

    # Default path: bf16 MXU inputs, f32 accumulation/epilogue.
    out = jax.block_until_ready(lrsg_forward(x, weight, bias))
    assert out.shape == (B, C) and out.dtype == x.dtype
    assert jnp.allclose(out, ref, atol=2e-2), float(jnp.max(jnp.abs(out - ref)))

    # Full-f32 path + non-tile-multiple batch (exercises the padding path).
    out32 = jax.block_until_ready(
        lrsg_forward(x[:1000], weight, bias, compute_dtype=jnp.float32))
    assert out32.shape == (1000, C)
    assert jnp.allclose(out32, ref[:1000], atol=1e-2), float(
        jnp.max(jnp.abs(out32 - ref[:1000])))

    print("KERNEL_OK")
</pallas_src>

<mosaic_0001>
module attributes {stable_mosaic.version = 11 : i64} {
  func.func @_lrsg_kernel(%arg0: i32, %arg1: memref<512x32xbf16, #tpu.memory_space<vmem>>, %arg2: memref<32x128xbf16, #tpu.memory_space<vmem>>, %arg3: memref<1x128xf32, #tpu.memory_space<vmem>>, %arg4: memref<512x128xf32, #tpu.memory_space<vmem>>) attributes {dimension_semantics = [#tpu.dimension_semantics<parallel>], iteration_bounds = array<i64: 2>, scalar_prefetch = 0 : i64, scratch_operands = 0 : i64, tpu.core_type = #tpu.core_type<tc>, window_params = [{transform_indices = @transform_0, window_bounds = array<i64: 512, 32>}, {pipeline_mode = #tpu.pipeline_mode<synchronous>, transform_indices = @transform_1, window_bounds = array<i64: 32, 128>}, {pipeline_mode = #tpu.pipeline_mode<synchronous>, transform_indices = @transform_2, window_bounds = array<i64: 1, 128>}, {transform_indices = @transform_3, window_bounds = array<i64: 512, 128>}]} {
    %c0 = arith.constant 0 : index
    %c0_0 = arith.constant 0 : index
    %0 = vector.load %arg1[%c0, %c0_0] : memref<512x32xbf16, #tpu.memory_space<vmem>>, vector<512x32xbf16>
    %c0_1 = arith.constant 0 : index
    %c0_2 = arith.constant 0 : index
    %1 = vector.load %arg2[%c0_1, %c0_2] : memref<32x128xbf16, #tpu.memory_space<vmem>>, vector<32x128xbf16>
    %cst = arith.constant dense<0.000000e+00> : vector<512x128xf32>
    %2 = tpu.matmul %0, %1, %cst {dimension_numbers = #tpu.dot_dimension_numbers<[1], [0], [0], [1], [0, 0, 1, 1], [], []>} : vector<512x32xbf16>, vector<32x128xbf16>, vector<512x128xf32> -> vector<512x128xf32>
    %c0_3 = arith.constant 0 : index
    %c0_4 = arith.constant 0 : index
    %3 = vector.load %arg3[%c0_3, %c0_4] : memref<1x128xf32, #tpu.memory_space<vmem>>, vector<1x128xf32>
    %4 = vector.broadcast %3 : vector<1x128xf32> to vector<512x128xf32>
    %5 = arith.addf %2, %4 : vector<512x128xf32>
    %cst_5 = arith.constant 0.000000e+00 : f32
    %6 = vector.broadcast %cst_5 : f32 to vector<512x128xf32>
    %7 = arith.subf %6, %5 : vector<512x128xf32>
    %8 = math.exp %7 : vector<512x128xf32>
    %cst_6 = arith.constant 1.000000e+00 : f32
    %9 = vector.broadcast %cst_6 : f32 to vector<512x128xf32>
    %10 = arith.addf %9, %8 : vector<512x128xf32>
    %11 = tpu.reciprocal %10 {approx = true} : vector<512x128xf32> -> vector<512x128xf32>
    %c0_7 = arith.constant 0 : index
    %c0_8 = arith.constant 0 : index
    %12 = vector.load %arg4[%c0_7, %c0_8] : memref<512x128xf32, #tpu.memory_space<vmem>>, vector<512x128xf32>
    tpu.vector_store %arg4[%c0_7, %c0_8], %11 {strides = array<i32>} : memref<512x128xf32, #tpu.memory_space<vmem>>, vector<512x128xf32>,
    return
  }
  func.func @transform_0(%arg0: i32) -> (i32, i32) {
    %c0_i32 = arith.constant 0 : i32
    %c0_i32_0 = arith.constant 0 : i32
    return %arg0, %c0_i32 : i32, i32
  }
  func.func @transform_1(%arg0: i32) -> (i32, i32) {
    %c0_i32 = arith.constant 0 : i32
    %c0_i32_0 = arith.constant 0 : i32
    %c0_i32_1 = arith.constant 0 : i32
    return %c0_i32, %c0_i32_0 : i32, i32
  }
  func.func @transform_2(%arg0: i32) -> (i32, i32) {
    %c0_i32 = arith.constant 0 : i32
    %c0_i32_0 = arith.constant 0 : i32
    %c0_i32_1 = arith.constant 0 : i32
    return %c0_i32, %c0_i32_0 : i32, i32
  }
  func.func @transform_3(%arg0: i32) -> (i32, i32) {
    %c0_i32 = arith.constant 0 : i32
    %c0_i32_0 = arith.constant 0 : i32
    return %arg0, %c0_i32 : i32, i32
  }
}

</mosaic_0001>

<bundles_post_ra>
// kernel: tpu_custom_call.1
= control target key start
LH: loop header
LB: loop body
LE: loop exit
PB: predicated region body
PF: predicated region fallthrough
CT: control target
= control target key end

     0   :  { %8 = vsyncpa [#allocation3], 0  ;;  %s2303_s0 = inlined_call_operand.vmem [shape: bf16[1024,32], index: 0, kind: input, shape index: {}]   ;;  %s2304_s1 = inlined_call_operand.vmem [shape: bf16[32,128], index: 1, kind: input, shape index: {}]   ;;  %s2305_s2 = inlined_call_operand.vmem [shape: f32[1,128], index: 2, kind: input, shape index: {}]   ;;  %s2306_s3 = inlined_call_operand.hbm [shape: f32[1024,128], index: 3, kind: output, shape index: {}]  }
   0x1   :  { %10 = vsyncpa [#allocation3 + $0x1], 0  ;;  %s1871_s12 = smov 0   ;;  %s1873_s13 = smov 0  }
   0x2   :  { %s1875_s14 = smov 0   ;;  %s1877_s15 = smov 0  }
   0x3 LB: > { %s1892_s16 = sadd.s32 4294967295, %s1846_s15   ;;  %s1266_s17 = sadd.s32 4294967294, %s1846_s15   ;;  %s1846_s15 = sphi %s1877_s15, %s2312_s15   ;;  %s1842_s14 = sphi %s1875_s14, %s2311_s14   ;;  %s1838_s13 = sphi %s1873_s13, %s2310_s13   ;;  %s1834_s12 = sphi %s1871_s12, %s2309_s12  }
   0x4   : > { %s1896_s18 = sadd.s32 1, %s1846_s15   ;;  %s91_s19 = sadd.s32 1, %s1842_s14 }
   0x5   : > { %s88_s20 = ssub.s32 %s1846_s15, %s1896_s18  ;;  %p101_p0 = scmp.ne.s32.totalorder %s1842_s14, %s1838_s13 }
   0x6   : > { %p89_p1 = scmp.eq.s32.totalorder %s88_s20, 0  ;;  %p102_p2 = scmp.eq.s32.totalorder %s1892_s16, 1 }
   0x7   : > { %p107_p3 = scmp.ne.s32.totalorder %s1838_s13, %s1834_s12  ;;  %p108_p4 = scmp.eq.s32.totalorder %s1266_s17, 1 }
   0x8   : > { %s1907_s21 = scalar_select %p89_p1, %s1842_s14, %s91_s19  }
   0x9   : > { %p1909_p5 = por %p102_p2, %p101_p0  ;;  %p1913_p6 = por %p108_p4, %p107_p3 }
   0xa   : > { %p1269_p7 = scmp.ge.s32.totalorder %s1846_s15, 1  ;;  %p141_p8 = scmp.lt.s32.totalorder %s1846_s15, 3 }
   0xc   : > { %p142_p9 = pnand %p1269_p7, %p141_p8 }
   0xd   : > { %v1493_v0 = vld [vmem:[%s2304_s1] sm:$0xff] (!%p142_p9)   ;;  %s1271_s26 = sshll.u32 (!%p142_p9), %s1892_s16, 6  ;;  %v1494_v1 = vld [vmem:[%s2304_s1 + $0x8] sm:$0xff] (!%p142_p9)   ;;  %vm420_vm0 = vcmask (!%p142_p9), 261120   ;;  %s162_s8 = sand.u32 (!%p142_p9), 1, %s1838_s13  }
   0xe   : > { %145 = sbr.rel (%p142_p9) target bundleno = 400 (0x190), region = 32  ;;  %p166_p10 = scmp.lt.s32.totalorder (!%p142_p9), %s1271_s26, 127  ;;  %1380 = vmatprep.subr.bf16.mxu0 (!%p142_p9), %v1493_v0  ;;  %1448 = vmatprep.subr.bf16.mxu1 (!%p142_p9), %v1493_v0  ;;  %v1998_v34 = vld [vmem:[%s2305_s2] ss:$0 sm:$0xff] (!%p142_p9) }
   0xf   : > { %1381 = vmatpush3.bf16.msra.mxu0 (!%p142_p9), %v1493_v0  ;;  %1450 = vmatpush3.bf16.msra.mxu1 (!%p142_p9), %v1493_v0  ;;  %s2022_s9 = sshll.u32 (!%p142_p9), %s162_s8, 9  ;;  %s1345_s19 = sshll.u32 (!%p142_p9), %s1892_s16, 13 }
  0x10   : > { %1382 = vmatprep.subr.bf16.mxu0 (!%p142_p9), %v1494_v1  ;;  %1449 = vmatprep.subr.bf16.mxu1 (!%p142_p9), %v1494_v1  ;;  %s2043_s10 = scalar_lea.vmem (!%p142_p9), [#allocation2], %s2022_s9  ;;  %s2262_s16 = scalar_lea.sflag (!%p142_p9), [#allocation3], %s162_s8 }
  0x11   : > { %s1204_s20 = sshll.u32 (!%p142_p9), %s2043_s10, 4  ;;  %s1848_s28 = smov (!%p142_p9), [#allocation2]   ;;  %s2255_s20 = int_to_ptr.vmem [resolvable:$true] %s1204_s20 }
  0x12   : > { %s1784_s27 = scalar_lea.vmem (!%p142_p9), %s2255_s20, 8192 }
  0x13   : > { %1383 = vmatpush3.bf16.msra.mxu0 (!%p142_p9), %v1494_v1  ;;  %1451 = vmatpush3.bf16.msra.mxu1 (!%p142_p9), %v1494_v1  ;;  %p1785_p11 = scmp.ne.s32.totalorder (!%p142_p9), %s2255_s20, %s1784_s27 }
  0x15   : > { %s2314_s26 = smov (!%p166_p10, %s1271_s26), 127  ;;  %p1786_p12 = pnand %p1785_p11, %p1909_p5 }
  0x16   : > { %s1272_s29 = sshll.u32 %s2314_s26, 2  ;;  %s2253_s26 = scalar_lea.hbm %s2306_s3, %s1345_s19 }
  0x17   : > { %s1929_s5 = scalar_lea.vmem %s2303_s0, %s1272_s29  ;;  %p1787_p13 = pneg %p1786_p12 }
  0x18   : > { %v1495_v2 = vld [vmem:[%s1929_s5] sm:$0xff]   ;;  %v1497_v4 = vld [vmem:[%s1929_s5 + $0x8] sm:$0xff]   ;;  %v1499_v6 = vld [vmem:[%s1929_s5 + $0x10] sm:$0xff]   ;;  %s1788_s29 = sshll.u32 %s1848_s28, 4  ;;  %s1789_s29 = int_to_ptr.vmem [resolvable:$false] %s1788_s29 }
  0x19   : > { %v1496_v3 = vld [vmem:[%s1929_s5 + $0x80] sm:$0xff]   ;;  %1384 = vmatprep.mubr.msk.bf16.mxu0 %vm420_vm0, %v1495_v2  ;;  %v1498_v5 = vld [vmem:[%s1929_s5 + $0x88] sm:$0xff]   ;;  %v1500_v7 = vld [vmem:[%s1929_s5 + $0x90] sm:$0xff]   ;;  %s1790_s30 = scalar_lea.vmem %s1789_s29, 16384  ;;  %p1791_p0 = scmp.lt.s32.totalorder %s2255_s20, %s1789_s29 }
  0x1a   : > { %1416 = vmatprep.mubr.msk.bf16.mxu1 %vm420_vm0, %v1496_v3  ;;  %1385 = vmatmul.mubr.msk.bf16.vlgmr.msra.gmra.mrb[0].mxu0 %vm420_vm0, %v1497_v4  ;;  %v1501_v8 = vld [vmem:[%s1929_s5 + $0x18] sm:$0xff]   ;;  %v1503_v10 = vld [vmem:[%s1929_s5 + $0x20] sm:$0xff]   ;;  %v1505_v12 = vld [vmem:[%s1929_s5 + $0x28] sm:$0xff]   ;;  %p1792_p1 = scmp.lt.s32.totalorder %s1790_s30, %s1784_s27 }
  0x1b   : > { %1417 = vmatmul.mubr.msk.bf16.vlgmr.msra.gmra.mrb[0].mxu1 %vm420_vm0, %v1498_v5  ;;  %1388 = vmatprep.mubr.msk.bf16.mxu0 %vm420_vm0, %v1499_v6  ;;  %v1502_v9 = vld [vmem:[%s1929_s5 + $0x98] sm:$0xff]   ;;  %v1504_v11 = vld [vmem:[%s1929_s5 + $0xa0] sm:$0xff]   ;;  %v1506_v13 = vld [vmem:[%s1929_s5 + $0xa8] sm:$0xff]  }
  0x1c   : > { %1420 = vmatprep.mubr.msk.bf16.mxu1 %vm420_vm0, %v1500_v7  ;;  %v1507_v14 = vld [vmem:[%s1929_s5 + $0x30] sm:$0xff]   ;;  %v1509_v16 = vld [vmem:[%s1929_s5 + $0x38] sm:$0xff]   ;;  %v1511_v18 = vld [vmem:[%s1929_s5 + $0x40] sm:$0xff]   ;;  %p1793_p2 = por %p1792_p1, %p1791_p0 }
  0x1d   : > { %v1508_v15 = vld [vmem:[%s1929_s5 + $0xb0] sm:$0xff]   ;;  %v1510_v17 = vld [vmem:[%s1929_s5 + $0xb8] sm:$0xff]   ;;  %v1512_v19 = vld [vmem:[%s1929_s5 + $0xc0] sm:$0xff]  }
  0x1e   : > { %v1513_v20 = vld [vmem:[%s1929_s5 + $0x48] sm:$0xff]   ;;  %v1515_v22 = vld [vmem:[%s1929_s5 + $0x50] sm:$0xff]   ;;  %v1517_v24 = vld [vmem:[%s1929_s5 + $0x58] sm:$0xff]   ;;  %p1794_p3 = pnand %p1793_p2, %p1787_p13 }
  0x1f   : > { %v1514_v21 = vld [vmem:[%s1929_s5 + $0xc8] sm:$0xff]   ;;  %v1516_v23 = vld [vmem:[%s1929_s5 + $0xd0] sm:$0xff]   ;;  %v1518_v25 = vld [vmem:[%s1929_s5 + $0xd8] sm:$0xff]  }
  0x20   : > { %v1519_v26 = vld [vmem:[%s1929_s5 + $0x60] sm:$0xff]   ;;  %v1521_v28 = vld [vmem:[%s1929_s5 + $0x68] sm:$0xff]   ;;  %v1523_v30 = vld [vmem:[%s1929_s5 + $0x70] sm:$0xff]  }
  0x21   : > { %v1520_v27 = vld [vmem:[%s1929_s5 + $0xe0] sm:$0xff]   ;;  %v1522_v29 = vld [vmem:[%s1929_s5 + $0xe8] sm:$0xff]   ;;  %v1524_v31 = vld [vmem:[%s1929_s5 + $0xf0] sm:$0xff]  }
  0x22   : > { %1389 = vmatmul.mubr.msk.bf16.gmra.mrb[4].mxu0 %vm420_vm0, %v1501_v8  ;;  %v1525_v32 = vld [vmem:[%s1929_s5 + $0x78] sm:$0xff]  }
  0x23   : > { %1421 = vmatmul.mubr.msk.bf16.gmra.mrb[4].mxu1 %vm420_vm0, %v1502_v9  ;;  %1392 = vmatprep.mubr.msk.bf16.mxu0 %vm420_vm0, %v1503_v10  ;;  %v1526_v33 = vld [vmem:[%s1929_s5 + $0xf8] sm:$0xff]  }
  0x24   : > { %1424 = vmatprep.mubr.msk.bf16.mxu1 %vm420_vm0, %v1504_v11 }
  0x2a   : > { %1393 = vmatmul.mubr.msk.bf16.gmra.mrb[8].mxu0 %vm420_vm0, %v1505_v12 }
  0x2b   : > { %1425 = vmatmul.mubr.msk.bf16.gmra.mrb[8].mxu1 %vm420_vm0, %v1506_v13  ;;  %1396 = vmatprep.mubr.msk.bf16.mxu0 %vm420_vm0, %v1507_v14 }
  0x2c   : > { %1428 = vmatprep.mubr.msk.bf16.mxu1 %vm420_vm0, %v1508_v15 }
  0x32   : > { %1397 = vmatmul.mubr.msk.bf16.gmra.mrb[12].mxu0 %vm420_vm0, %v1509_v16 }
  0x33   : > { %1429 = vmatmul.mubr.msk.bf16.gmra.mrb[12].mxu1 %vm420_vm0, %v1510_v17  ;;  %1400 = vmatprep.mubr.msk.bf16.mxu0 %vm420_vm0, %v1511_v18 }
  0x34   : > { %1432 = vmatprep.mubr.msk.bf16.mxu1 %vm420_vm0, %v1512_v19 }
  0x3a   : > { %1401 = vmatmul.mubr.msk.bf16.gmra.mrb[16].mxu0 %vm420_vm0, %v1513_v20 }
  0x3b   : > { %1433 = vmatmul.mubr.msk.bf16.gmra.mrb[16].mxu1 %vm420_vm0, %v1514_v21  ;;  %1404 = vmatprep.mubr.msk.bf16.mxu0 %vm420_vm0, %v1515_v22 }
  0x3c   : > { %1436 = vmatprep.mubr.msk.bf16.mxu1 %vm420_vm0, %v1516_v23 }
  0x42   : > { %1405 = vmatmul.mubr.msk.bf16.gmra.mrb[20].mxu0 %vm420_vm0, %v1517_v24 }
  0x43   : > { %1437 = vmatmul.mubr.msk.bf16.gmra.mrb[20].mxu1 %vm420_vm0, %v1518_v25  ;;  %1408 = vmatprep.mubr.msk.bf16.mxu0 %vm420_vm0, %v1519_v26 }
  0x44   : > { %1440 = vmatprep.mubr.msk.bf16.mxu1 %vm420_vm0, %v1520_v27 }
  0x4a   : > { %1409 = vmatmul.mubr.msk.bf16.gmra.mrb[24].mxu0 %vm420_vm0, %v1521_v28 }
  0x4b   : > { %1441 = vmatmul.mubr.msk.bf16.gmra.mrb[24].mxu1 %vm420_vm0, %v1522_v29  ;;  %1412 = vmatprep.mubr.msk.bf16.mxu0 %vm420_vm0, %v1523_v30 }
  0x4c   : > { %1444 = vmatprep.mubr.msk.bf16.mxu1 %vm420_vm0, %v1524_v31 }
  0x52   : > { %1413 = vmatmul.mubr.msk.bf16.gmra.mrb[28].mxu0 %vm420_vm0, %v1525_v32 }
  0x53   : > { %1445 = vmatmul.mubr.msk.bf16.gmra.mrb[28].mxu1 %vm420_vm0, %v1526_v33 }
  0xed   : > { %v1386_v35 = vpop.f32.mrb[0].mxu0 }
  0xee   : > { %v560_v36 = vadd.f32 %v1386_v35, %v1998_v34  ;;  %v1418_v37 = vpop.f32.mrb[0].mxu1  ;;  %v551_v38 = vpop.f32.mrb[1].mxu0 }
  0xef   : > { %v688_v39 = vadd.f32 %v1418_v37, %v1998_v34  ;;  %v552_v40 = vadd.f32 %v1998_v34, %v551_v38  ;;  %v679_v41 = vpop.f32.mrb[1].mxu1  ;;  %v1387_v42 = vpop.f32.mrb[2].mxu0 }
  0xf0   : > { %v808_v43 = vsub.f32 0.0, %v560_v36  ;;  %v680_v44 = vadd.f32 %v1998_v34, %v679_v41  ;;  %v563_v45 = vadd.f32 %v1387_v42, %v1998_v34  ;;  %v1419_v46 = vpop.f32.mrb[2].mxu1  ;;  %v554_v47 = vpop.f32.mrb[3].mxu0 }
  0xf1   : > { %v840_v48 = vsub.f32 0.0, %v688_v39  ;;  %v806_v49 = vsub.f32 0.0, %v552_v40  ;;  %v691_v50 = vadd.f32 %v1419_v46, %v1998_v34  ;;  %v555_v51 = vadd.f32 %v1998_v34, %v554_v47  ;;  %v682_v52 = vpop.f32.mrb[3].mxu1 }
  0xf2   : > { %v874_v53 = vmul.f32 1.442695, %v808_v43  ;;  %v838_v54 = vsub.f32 0.0, %v680_v44  ;;  %v809_v55 = vsub.f32 0.0, %v563_v45  ;;  %v683_v56 = vadd.f32 %v1998_v34, %v682_v52 }
  0xf3   : > { %v938_v57 = vmul.f32 1.442695, %v840_v48  ;;  %v870_v58 = vmul.f32 1.442695, %v806_v49  ;;  %v841_v59 = vsub.f32 0.0, %v691_v50  ;;  %v807_v60 = vsub.f32 0.0, %v555_v51 }
  0xf4   : > { %1527 = vpow2.f32 %v874_v53  ;;  %v934_v61 = vmul.f32 1.442695, %v838_v54  ;;  %v876_v62 = vmul.f32 1.442695, %v809_v55  ;;  %v839_v63 = vsub.f32 0.0, %v683_v56 }
  0xf5   : > { %1529 = vpow2.f32 %v938_v57  ;;  %v940_v0 = vmul.f32 1.442695, %v841_v59  ;;  %v1390_v1 = vpop.f32.mrb[4].mxu0  ;;  %v872_v2 = vmul.f32 1.442695, %v807_v60 }
  0xf6   : > { %1531 = vpow2.f32 %v870_v58  ;;  %v576_v3 = vadd.f32 %v1390_v1, %v1998_v34  ;;  %v1422_v4 = vpop.f32.mrb[4].mxu1  ;;  %v567_v5 = vpop.f32.mrb[5].mxu0  ;;  %v936_v6 = vmul.f32 1.442695, %v839_v63 }
  0xf7   : > { %1533 = vpow2.f32 %v934_v61  ;;  %v704_v7 = vadd.f32 %v1422_v4, %v1998_v34  ;;  %v568_v8 = vadd.f32 %v1998_v34, %v567_v5  ;;  %v695_v9 = vpop.f32.mrb[5].mxu1  ;;  %v1391_v10 = vpop.f32.mrb[6].mxu0 }
  0xf8   : > { %1535 = vpow2.f32 %v876_v62  ;;  %v812_v11 = vsub.f32 0.0, %v576_v3  ;;  %v696_v12 = vadd.f32 %v1998_v34, %v695_v9  ;;  %v579_v13 = vadd.f32 %v1391_v10, %v1998_v34  ;;  %v1423_v14 = vpop.f32.mrb[6].mxu1  ;;  %v570_v15 = vpop.f32.mrb[7].mxu0 }
  0xf9   : > { %1537 = vpow2.f32 %v940_v0  ;;  %v844_v16 = vsub.f32 0.0, %v704_v7  ;;  %v810_v17 = vsub.f32 0.0, %v568_v8  ;;  %v698_v18 = vpop.f32.mrb[7].mxu1  ;;  %v707_v28 = vadd.f32 %v1423_v14, %v1998_v34 }
  0xfa   : > { %1539 = vpow2.f32 %v872_v2  ;;  %v882_v19 = vmul.f32 1.442695, %v812_v11  ;;  %v842_v20 = vsub.f32 0.0, %v696_v12  ;;  %v813_v21 = vsub.f32 0.0, %v579_v13 }
  0xfb   : > { %1541 = vpow2.f32 %v936_v6  ;;  %v946_v22 = vmul.f32 1.442695, %v844_v16  ;;  %v878_v23 = vmul.f32 1.442695, %v810_v17  ;;  %v571_v38 = vadd.f32 %v1998_v34, %v570_v15 }
  0xfc   : > { %1543 = vpow2.f32 %v882_v19  ;;  %v942_v24 = vmul.f32 1.442695, %v842_v20  ;;  %v884_v25 = vmul.f32 1.442695, %v813_v21  ;;  %v845_v46 = vsub.f32 0.0, %v707_v28 }
  0xfd   : > { %1545 = vpow2.f32 %v946_v22  ;;  %v1394_v26 = vpop.f32.mrb[8].mxu0  ;;  %v699_v49 = vadd.f32 %v1998_v34, %v698_v18  ;;  %v811_v52 = vsub.f32 0.0, %v571_v38 }
  0xfe   : > { %v1528_v27 = vpop.eup %1527  ;;  %1547 = vpow2.f32 %v878_v23  ;;  %v1426_v29 = vpop.f32.mrb[8].mxu1  ;;  %v592_v55 = vadd.f32 %v1394_v26, %v1998_v34  ;;  %v948_v59 = vmul.f32 1.442695, %v845_v46 }
  0xff   : > { %v583_v30 = vpop.f32.mrb[9].mxu0  ;;  %v1530_v31 = vpop.eup %1529  ;;  %v1000_v32 = vadd.f32 1.0, %v1528_v27  ;;  %1549 = vpow2.f32 %v942_v24  ;;  %v720_v60 = vadd.f32 %v1426_v29, %v1998_v34  ;;  %v843_v1 = vsub.f32 0.0, %v699_v49 }
 0x100   : > { %v711_v33 = vpop.f32.mrb[9].mxu1  ;;  %v1395_v35 = vpop.f32.mrb[10].mxu0  ;;  %v1032_v37 = vadd.f32 1.0, %v1530_v31  ;;  %1551 = vpow2.f32 %v884_v25  ;;  %v584_v2 = vadd.f32 %v1998_v34, %v583_v30  ;;  %v880_v7 = vmul.f32 1.442695, %v811_v52 }
 0x101   : > { %v1532_v36 = vpop.eup %1531  ;;  %v1427_v39 = vpop.f32.mrb[10].mxu1  ;;  %1553 = vrcp.f32 %v1000_v32  ;;  %v712_v8 = vadd.f32 %v1998_v34, %v711_v33  ;;  %v816_v13 = vsub.f32 0.0, %v592_v55  ;;  %v595_v14 = vadd.f32 %v1395_v35, %v1998_v34 }
 0x102   : > { %v586_v40 = vpop.f32.mrb[11].mxu0  ;;  %v1534_v41 = vpop.eup %1533  ;;  %v998_v42 = vadd.f32 1.0, %v1532_v36  ;;  %1555 = vrcp.f32 %v1032_v37  ;;  %v848_v18 = vsub.f32 0.0, %v720_v60  ;;  %v723_v19 = vadd.f32 %v1427_v39, %v1998_v34 }
 0x103   : > { %v2015_v43 = vpop.f32.mrb[11].mxu1  ;;  %v1536_v44 = vpop.eup %1535  ;;  %v1030_v45 = vadd.f32 1.0, %v1534_v41  ;;  %v814_v22 = vsub.f32 0.0, %v584_v2  ;;  %v587_v23 = vadd.f32 %v1998_v34, %v586_v40  ;;  %v944_v25 = vmul.f32 1.442695, %v843_v1 }
 0x104   : > { %v1538_v47 = vpop.eup %1537  ;;  %1557 = vrcp.f32 %v998_v42  ;;  %v1001_v48 = vadd.f32 1.0, %v1536_v44  ;;  %v846_v26 = vsub.f32 0.0, %v712_v8  ;;  %v715_v27 = vadd.f32 %v1998_v34, %v2015_v43 }
 0x105   : > { %v1540_v50 = vpop.eup %1539  ;;  %1559 = vrcp.f32 %v1030_v45  ;;  %v1033_v51 = vadd.f32 1.0, %v1538_v47  ;;  %v1398_v56 = vpop.f32.mrb[12].mxu0  ;;  %v890_v29 = vmul.f32 1.442695, %v816_v13  ;;  %v817_v30 = vsub.f32 0.0, %v595_v14 }
 0x106   : > { %v1542_v53 = vpop.eup %1541  ;;  %1561 = vrcp.f32 %v1001_v48  ;;  %v999_v54 = vadd.f32 1.0, %v1540_v50  ;;  %v1430_v61 = vpop.f32.mrb[12].mxu1  ;;  %v608_v31 = vadd.f32 %v1398_v56, %v1998_v34  ;;  %v954_v35 = vmul.f32 1.442695, %v848_v18 }
 0x107   : > { %v1544_v57 = vpop.eup %1543  ;;  %1563 = vrcp.f32 %v1033_v51  ;;  %v1031_v58 = vadd.f32 1.0, %v1542_v53  ;;  %v2025_v62 = vpop.f32.mrb[13].mxu0  ;;  %v849_v36 = vsub.f32 0.0, %v723_v19  ;;  %v736_v37 = vadd.f32 %v1430_v61, %v1998_v34 }
 0x108   : > { %v1546_v63 = vpop.eup %1545  ;;  %1565 = vrcp.f32 %v999_v54  ;;  %v1004_v0 = vadd.f32 1.0, %v1544_v57  ;;  %v2028_v3 = vpop.f32.mrb[13].mxu1  ;;  %v886_v41 = vmul.f32 1.442695, %v814_v22  ;;  %v815_v42 = vsub.f32 0.0, %v587_v23 }
 0x109   : > { %v2030_v4 = vpop.f32.mrb[14].mxu0  ;;  %v1548_v5 = vpop.eup %1547  ;;  %1567 = vrcp.f32 %v1031_v58  ;;  %v1036_v6 = vadd.f32 1.0, %v1546_v63  ;;  %v950_v46 = vmul.f32 1.442695, %v846_v26  ;;  %v847_v47 = vsub.f32 0.0, %v715_v27 }
 0x10a   : > { %v2033_v9 = vpop.f32.mrb[14].mxu1  ;;  %v2035_v10 = vpop.f32.mrb[15].mxu0  ;;  %1569 = vrcp.f32 %v1004_v0  ;;  %v1002_v12 = vadd.f32 1.0, %v1548_v5  ;;  %v892_v51 = vmul.f32 1.442695, %v817_v30  ;;  %v820_v52 = vsub.f32 0.0, %v608_v31 }
 0x10b   : > { %v1550_v11 = vpop.eup %1549  ;;  %v2038_v15 = vpop.f32.mrb[15].mxu1  ;;  %1571 = vrcp.f32 %v1036_v6  ;;  %v956_v55 = vmul.f32 1.442695, %v849_v36  ;;  %v852_v56 = vsub.f32 0.0, %v736_v37  ;;  %v888_v58 = vmul.f32 1.442695, %v815_v42 }
 0x10c   : > { %v1552_v16 = vpop.eup %1551  ;;  %v1034_v17 = vadd.f32 1.0, %v1550_v11  ;;  %1573 = vrcp.f32 %v1002_v12  ;;  %v952_v60 = vmul.f32 1.442695, %v847_v47  ;;  %v898_v63 = vmul.f32 1.442695, %v820_v52 }
 0x10d   : > { %v1554_v20 = vpop.eup %1553  ;;  %v1005_v21 = vadd.f32 1.0, %v1552_v16  ;;  %v2050_v32 = vpop.f32.mrb[16].mxu0  ;;  %v962_v2 = vmul.f32 1.442695, %v852_v56  ;;  %v600_v13 = vadd.f32 %v1998_v34, %v2025_v62  ;;  %v728_v22 = vadd.f32 %v1998_v34, %v2028_v3 }
 0x10e   : > { %v1556_v24 = vpop.eup %1555  ;;  %1128 = vst [vmem:[%s2043_s10 + $0x10] sm:$0xff] %v1554_v20  ;;  %1575 = vrcp.f32 %v1034_v17  ;;  %v2054_v38 = vpop.f32.mrb[16].mxu1 }
 0x10f   : > { %v1558_v28 = vpop.eup %1557  ;;  %1160 = vst [vmem:[%s2043_s10 + $0x110] sm:$0xff] %v1556_v24  ;;  %1577 = vrcp.f32 %v1005_v21  ;;  %v2056_v39 = vpop.f32.mrb[17].mxu0  ;;  %v818_v26 = vsub.f32 0.0, %v600_v13 }
 0x110   : > { %v1560_v33 = vpop.eup %1559  ;;  %1126 = vst [vmem:[%s2043_s10] sm:$0xff] %v1558_v28  ;;  %1579 = vpow2.f32 %v948_v59  ;;  %v2059_v43 = vpop.f32.mrb[17].mxu1  ;;  %v616_v13 = vadd.f32 %v1998_v34, %v2056_v39 }
 0x111   : > { %v1562_v40 = vpop.eup %1561  ;;  %1158 = vst [vmem:[%s2043_s10 + $0x100] sm:$0xff] %v1560_v33  ;;  %1581 = vpow2.f32 %v880_v7  ;;  %v2061_v44 = vpop.f32.mrb[18].mxu0  ;;  %v894_v47 = vmul.f32 1.442695, %v818_v26 }
 0x112   : > { %v1564_v45 = vpop.eup %1563  ;;  %1129 = vst [vmem:[%s2043_s10 + $0x18] sm:$0xff] %v1562_v40  ;;  %1583 = vpow2.f32 %v944_v25  ;;  %v2064_v48 = vpop.f32.mrb[18].mxu1 }
 0x113   : > { %v2066_v49 = vpop.f32.mrb[19].mxu0  ;;  %v1566_v50 = vpop.eup %1565  ;;  %1161 = vst [vmem:[%s2043_s10 + $0x118] sm:$0xff] %v1564_v45  ;;  %1585 = vpow2.f32 %v890_v29  ;;  %v611_v29 = vadd.f32 %v2030_v4, %v1998_v34 }
 0x114   : > { %v2069_v53 = vpop.f32.mrb[19].mxu1  ;;  %v1568_v54 = vpop.eup %1567  ;;  %1127 = vst [vmem:[%s2043_s10 + $0x8] sm:$0xff] %v1566_v50  ;;  %1587 = vpow2.f32 %v954_v35  ;;  %v850_v35 = vsub.f32 0.0, %v728_v22  ;;  %v603_v50 = vadd.f32 %v1998_v34, %v2035_v10  ;;  %v624_v10 = vadd.f32 %v2050_v32, %v1998_v34 }
 0x115   : > { %v1570_v57 = vpop.eup %1569  ;;  %1159 = vst [vmem:[%s2043_s10 + $0x108] sm:$0xff] %v1568_v54  ;;  %1589 = vpow2.f32 %v886_v41  ;;  %v2075_v0 = vpop.f32.mrb[20].mxu0  ;;  %v739_v41 = vadd.f32 %v2033_v9, %v1998_v34  ;;  %v821_v56 = vsub.f32 0.0, %v611_v29  ;;  %v731_v9 = vadd.f32 %v1998_v34, %v2038_v15 }
 0x116   : > { %v1572_v59 = vpop.eup %1571  ;;  %1132 = vst [vmem:[%s2043_s10 + $0x30] sm:$0xff] %v1570_v57  ;;  %1591 = vpow2.f32 %v950_v46  ;;  %v2078_v5 = vpop.f32.mrb[20].mxu1 }
 0x117   : > { %v1574_v61 = vpop.eup %1573  ;;  %1164 = vst [vmem:[%s2043_s10 + $0x130] sm:$0xff] %v1572_v59  ;;  %1593 = vpow2.f32 %v892_v51  ;;  %v2080_v6 = vpop.f32.mrb[21].mxu0  ;;  %v851_v32 = vsub.f32 0.0, %v731_v9 }
 0x118   : > { %v1576_v1 = vpop.eup %1575  ;;  %1130 = vst [vmem:[%s2043_s10 + $0x20] sm:$0xff] %v1574_v61  ;;  %1595 = vpow2.f32 %v956_v55  ;;  %v2083_v8 = vpop.f32.mrb[21].mxu1 }
 0x119   : > { %v1578_v7 = vpop.eup %1577  ;;  %1162 = vst [vmem:[%s2043_s10 + $0x120] sm:$0xff] %v1576_v1  ;;  %1597 = vpow2.f32 %v888_v58  ;;  %v2085_v11 = vpop.f32.mrb[22].mxu0  ;;  %v853_v1 = vsub.f32 0.0, %v739_v41 }
 0x11a   : > { %v1580_v12 = vpop.eup %1579  ;;  %1133 = vst [vmem:[%s2043_s10 + $0x38] sm:$0xff] %v1578_v7  ;;  %1599 = vpow2.f32 %v952_v60  ;;  %v2090_v14 = vpop.f32.mrb[22].mxu1  ;;  %v958_v60 = vmul.f32 1.442695, %v850_v35  ;;  %v619_v35 = vadd.f32 %v1998_v34, %v2066_v49 }
 0x11b   : > { %v2092_v16 = vpop.f32.mrb[23].mxu0  ;;  %v1582_v17 = vpop.eup %1581  ;;  %v1037_v18 = vadd.f32 1.0, %v1580_v12  ;;  %1601 = vpow2.f32 %v898_v63  ;;  %v819_v12 = vsub.f32 0.0, %v603_v50 }
 0x11c   : > { %v2094_v19 = vpop.f32.mrb[23].mxu1  ;;  %v1584_v20 = vpop.eup %1583  ;;  %v1003_v21 = vadd.f32 1.0, %v1582_v17  ;;  %1603 = vpow2.f32 %v962_v2  ;;  %v752_v2 = vadd.f32 %v2054_v38, %v1998_v34  ;;  %v900_v38 = vmul.f32 1.442695, %v821_v56 }
 0x11d   : > { %v1586_v23 = vpop.eup %1585  ;;  %1605 = vrcp.f32 %v1037_v18  ;;  %v1035_v24 = vadd.f32 1.0, %v1584_v20  ;;  %v2100_v30 = vpop.f32.mrb[24].mxu0  ;;  %v744_v20 = vadd.f32 %v1998_v34, %v2059_v43  ;;  %v964_v43 = vmul.f32 1.442695, %v853_v1 }
 0x11e   : > { %v1588_v25 = vpop.eup %1587  ;;  %1607 = vrcp.f32 %v1003_v21  ;;  %v1008_v62 = vadd.f32 1.0, %v1586_v23  ;;  %v2102_v3 = vpop.f32.mrb[24].mxu1  ;;  %v824_v23 = vsub.f32 0.0, %v624_v10  ;;  %v856_v26 = vsub.f32 0.0, %v752_v2 }
 0x11f   : > { %v1590_v27 = vpop.eup %1589  ;;  %1609 = vrcp.f32 %v1035_v24  ;;  %v1040_v28 = vadd.f32 1.0, %v1588_v25  ;;  %v2104_v36 = vpop.f32.mrb[25].mxu0  ;;  %v627_v24 = vadd.f32 %v2061_v44, %v1998_v34  ;;  %v896_v44 = vmul.f32 1.442695, %v819_v12 }
 0x120   : > { %v1592_v31 = vpop.eup %1591  ;;  %1611 = vrcp.f32 %v1008_v62  ;;  %v1006_v33 = vadd.f32 1.0, %v1590_v27  ;;  %v2108_v42 = vpop.f32.mrb[25].mxu1  ;;  %v755_v27 = vadd.f32 %v2064_v48, %v1998_v34  ;;  %v960_v48 = vmul.f32 1.442695, %v851_v32 }
 0x121   : > { %v1594_v37 = vpop.eup %1593  ;;  %1613 = vrcp.f32 %v1040_v28  ;;  %v1038_v40 = vadd.f32 1.0, %v1592_v31  ;;  %v2110_v45 = vpop.f32.mrb[26].mxu0 }
 0x122   : > { %v1596_v4 = vpop.eup %1595  ;;  %1615 = vrcp.f32 %v1006_v33  ;;  %v1009_v46 = vadd.f32 1.0, %v1594_v37  ;;  %v2114_v51 = vpop.f32.mrb[26].mxu1  ;;  %v822_v33 = vsub.f32 0.0, %v616_v13  ;;  %v857_v56 = vsub.f32 0.0, %v755_v27 }
 0x123   : > { %v2116_v52 = vpop.f32.mrb[27].mxu0  ;;  %v1598_v54 = vpop.eup %1597  ;;  %1617 = vrcp.f32 %v1038_v40  ;;  %v1041_v55 = vadd.f32 1.0, %v1596_v4  ;;  %v854_v4 = vsub.f32 0.0, %v744_v20 }
 0x124   : > { %v2120_v57 = vpop.f32.mrb[27].mxu1  ;;  %v1600_v58 = vpop.eup %1599  ;;  %1619 = vrcp.f32 %v1009_v46  ;;  %v1007_v59 = vadd.f32 1.0, %v1598_v54  ;;  %v825_v54 = vsub.f32 0.0, %v627_v24  ;;  %v972_v2 = vmul.f32 1.442695, %v857_v56 }
 0x125   : > { %v1602_v61 = vpop.eup %1601  ;;  %1621 = vrcp.f32 %v1041_v55  ;;  %v1039_v63 = vadd.f32 1.0, %v1600_v58  ;;  %v2130_v21 = vpop.f32.mrb[28].mxu0  ;;  %v970_v55 = vmul.f32 1.442695, %v856_v26  ;;  %v902_v58 = vmul.f32 1.442695, %v822_v33 }
 0x126   : > { %v1604_v7 = vpop.eup %1603  ;;  %1623 = vrcp.f32 %v1007_v59  ;;  %v1012_v15 = vadd.f32 1.0, %v1602_v61  ;;  %v2135_v39 = vpop.f32.mrb[28].mxu1  ;;  %v823_v59 = vsub.f32 0.0, %v619_v35  ;;  %v966_v10 = vmul.f32 1.442695, %v854_v4 }
 0x127   : > { %v1606_v17 = vpop.eup %1605  ;;  %1625 = vrcp.f32 %v1039_v63  ;;  %v1044_v18 = vadd.f32 1.0, %v1604_v7  ;;  %v2137_v25 = vpop.f32.mrb[29].mxu0  ;;  %v908_v63 = vmul.f32 1.442695, %v825_v54  ;;  %v760_v54 = vadd.f32 %v1998_v34, %v2083_v8 }
 0x128   : > { %v1608_v22 = vpop.eup %1607  ;;  %1165 = vst [vmem:[%s2043_s10 + $0x138] sm:$0xff] %v1606_v17  ;;  %1627 = vrcp.f32 %v1012_v15  ;;  %v2142_v28 = vpop.f32.mrb[29].mxu1  ;;  %v904_v15 = vmul.f32 1.442695, %v823_v59  ;;  %v747_v17 = vadd.f32 %v1998_v34, %v2069_v53  ;;  %v768_v53 = vadd.f32 %v2078_v5, %v1998_v34 }
 0x129   : > { %v1610_v62 = vpop.eup %1609  ;;  %1131 = vst [vmem:[%s2043_s10 + $0x28] sm:$0xff] %v1608_v22  ;;  %1629 = vrcp.f32 %v1044_v18  ;;  %v2144_v29 = vpop.f32.mrb[30].mxu0  ;;  %v643_v56 = vadd.f32 %v2085_v11, %v1998_v34  ;;  %v635_v8 = vadd.f32 %v1998_v34, %v2092_v16  ;;  %v858_v11 = vsub.f32 0.0, %v760_v54 }
 0x12a   : > { %v1612_v31 = vpop.eup %1611  ;;  %1163 = vst [vmem:[%s2043_s10 + $0x128] sm:$0xff] %v1610_v62  ;;  %1631 = vpow2.f32 %v894_v47  ;;  %v2149_v37 = vpop.f32.mrb[30].mxu1  ;;  %v906_v47 = vmul.f32 1.442695, %v824_v23  ;;  %v855_v26 = vsub.f32 0.0, %v747_v17 }
 0x12b   : > { %v2151_v40 = vpop.f32.mrb[31].mxu0  ;;  %v1614_v41 = vpop.eup %1613  ;;  %1136 = vst [vmem:[%s2043_s10 + $0x50] sm:$0xff] %v1612_v31  ;;  %1633 = vpow2.f32 %v958_v60 }
 0x12c   : > { %v2154_v46 = vpop.f32.mrb[31].mxu1  ;;  %v1616_v50 = vpop.eup %1615  ;;  %1168 = vst [vmem:[%s2043_s10 + $0x150] sm:$0xff] %v1614_v41  ;;  %1635 = vpow2.f32 %v900_v38  ;;  %v640_v38 = vadd.f32 %v2075_v0, %v1998_v34 }
 0x12d   : > { %v1618_v49 = vpop.eup %1617  ;;  %1134 = vst [vmem:[%s2043_s10 + $0x40] sm:$0xff] %v1616_v50  ;;  %1637 = vpow2.f32 %v964_v43 }
 0x12e   : > { %v1620_v9 = vpop.eup %1619  ;;  %1166 = vst [vmem:[%s2043_s10 + $0x140] sm:$0xff] %v1618_v49  ;;  %1639 = vpow2.f32 %v896_v44  ;;  %v828_v35 = vsub.f32 0.0, %v640_v38 }
 0x12f   : > { %v1622_v60 = vpop.eup %1621  ;;  %1137 = vst [vmem:[%s2043_s10 + $0x58] sm:$0xff] %v1620_v9  ;;  %1641 = vpow2.f32 %v960_v48  ;;  %v632_v48 = vadd.f32 %v1998_v34, %v2080_v6  ;;  %v771_v6 = vadd.f32 %v2090_v14, %v1998_v34  ;;  %v829_v14 = vsub.f32 0.0, %v643_v56 }
 0x130   : > { %v1624_v61 = vpop.eup %1623  ;;  %1169 = vst [vmem:[%s2043_s10 + $0x158] sm:$0xff] %v1622_v60  ;;  %1643 = vpow2.f32 %v906_v47  ;;  %v968_v47 = vmul.f32 1.442695, %v855_v26  ;;  %v914_v59 = vmul.f32 1.442695, %v828_v35  ;;  %v659_v56 = vadd.f32 %v2110_v45, %v1998_v34 }
 0x131   : > { %v1626_v1 = vpop.eup %1625  ;;  %1135 = vst [vmem:[%s2043_s10 + $0x48] sm:$0xff] %v1624_v61  ;;  %1645 = vpow2.f32 %v970_v55  ;;  %v860_v55 = vsub.f32 0.0, %v768_v53  ;;  %v826_v61 = vsub.f32 0.0, %v632_v48  ;;  %v861_v17 = vsub.f32 0.0, %v771_v6 }
 0x132   : > { %v1628_v7 = vpop.eup %1627  ;;  %1167 = vst [vmem:[%s2043_s10 + $0x148] sm:$0xff] %v1626_v1  ;;  %1647 = vpow2.f32 %v902_v58  ;;  %v651_v45 = vadd.f32 %v1998_v34, %v2116_v52 }
 0x133   : > { %v1630_v12 = vpop.eup %1629  ;;  %1140 = vst [vmem:[%s2043_s10 + $0x70] sm:$0xff] %v1628_v7  ;;  %1649 = vpow2.f32 %v966_v10  ;;  %v978_v16 = vmul.f32 1.442695, %v860_v55 }
 0x134   : > { %v1632_v13 = vpop.eup %1631  ;;  %1172 = vst [vmem:[%s2043_s10 + $0x170] sm:$0xff] %v1630_v12  ;;  %1651 = vpow2.f32 %v908_v63  ;;  %v656_v12 = vadd.f32 %v2100_v30, %v1998_v34  ;;  %v974_v30 = vmul.f32 1.442695, %v858_v11 }
 0x135   : > { %v1634_v18 = vpop.eup %1633  ;;  %v1010_v32 = vadd.f32 1.0, %v1632_v13  ;;  %1653 = vpow2.f32 %v972_v2  ;;  %v763_v2 = vadd.f32 %v1998_v34, %v2094_v19  ;;  %v910_v19 = vmul.f32 1.442695, %v826_v61 }
 0x136   : > { %v1636_v20 = vpop.eup %1635  ;;  %v1042_v22 = vadd.f32 1.0, %v1634_v18  ;;  %1655 = vpow2.f32 %v904_v15  ;;  %v784_v18 = vadd.f32 %v2102_v3, %v1998_v34  ;;  %v916_v3 = vmul.f32 1.442695, %v829_v14 }
 0x137   : > { %v1638_v23 = vpop.eup %1637  ;;  %1657 = vrcp.f32 %v1010_v32  ;;  %v1013_v24 = vadd.f32 1.0, %v1636_v20  ;;  %v827_v20 = vsub.f32 0.0, %v635_v8  ;;  %v787_v61 = vadd.f32 %v2114_v51, %v1998_v34 }
 0x138   : > { %v1640_v62 = vpop.eup %1639  ;;  %1659 = vrcp.f32 %v1042_v22  ;;  %v1045_v43 = vadd.f32 1.0, %v1638_v23  ;;  %v648_v22 = vadd.f32 %v1998_v34, %v2104_v36  ;;  %v859_v23 = vsub.f32 0.0, %v763_v2 }
 0x139   : > { %v1642_v27 = vpop.eup %1641  ;;  %1661 = vrcp.f32 %v1013_v24  ;;  %v1011_v31 = vadd.f32 1.0, %v1640_v62  ;;  %v776_v24 = vadd.f32 %v1998_v34, %v2108_v42  ;;  %v980_v36 = vmul.f32 1.442695, %v861_v17 }
 0x13a   : > { %v1644_v44 = vpop.eup %1643  ;;  %1663 = vrcp.f32 %v1045_v43  ;;  %v1043_v33 = vadd.f32 1.0, %v1642_v27  ;;  %v832_v43 = vsub.f32 0.0, %v656_v12  ;;  %v864_v27 = vsub.f32 0.0, %v784_v18 }
 0x13b   : > { %v1646_v41 = vpop.eup %1645  ;;  %1665 = vrcp.f32 %v1011_v31  ;;  %v1016_v0 = vadd.f32 1.0, %v1644_v44  ;;  %v912_v53 = vmul.f32 1.442695, %v827_v20  ;;  %v830_v44 = vsub.f32 0.0, %v648_v22 }
 0x13c   : > { %v1648_v4 = vpop.eup %1647  ;;  %1667 = vrcp.f32 %v1043_v33  ;;  %v1048_v50 = vadd.f32 1.0, %v1646_v41  ;;  %v976_v33 = vmul.f32 1.442695, %v859_v23  ;;  %v862_v35 = vsub.f32 0.0, %v776_v24 }
 0x13d   : > { %v1650_v49 = vpop.eup %1649  ;;  %1669 = vrcp.f32 %v1016_v0  ;;  %v1014_v5 = vadd.f32 1.0, %v1648_v4  ;;  %v922_v0 = vmul.f32 1.442695, %v832_v43  ;;  %v986_v4 = vmul.f32 1.442695, %v864_v27 }
 0x13e   : > { %v1652_v9 = vpop.eup %1651  ;;  %1671 = vrcp.f32 %v1048_v50  ;;  %v1046_v58 = vadd.f32 1.0, %v1650_v49  ;;  %v982_v49 = vmul.f32 1.442695, %v862_v35  ;;  %v779_v14 = vadd.f32 %v1998_v34, %v2120_v57 }
 0x13f   : > { %v1654_v60 = vpop.eup %1653  ;;  %1673 = vrcp.f32 %v1014_v5  ;;  %v1017_v10 = vadd.f32 1.0, %v1652_v9  ;;  %v865_v51 = vsub.f32 0.0, %v787_v61  ;;  %v831_v20 = vsub.f32 0.0, %v651_v45 }
 0x140   : > { %v1656_v63 = vpop.eup %1655  ;;  %1675 = vrcp.f32 %v1046_v58  ;;  %v1049_v1 = vadd.f32 1.0, %v1654_v60  ;;  %v800_v22 = vadd.f32 %v2135_v39, %v1998_v34  ;;  %v664_v23 = vadd.f32 %v1998_v34, %v2137_v25 }
 0x141   : > { %v1658_v7 = vpop.eup %1657  ;;  %1677 = vrcp.f32 %v1017_v10  ;;  %v1015_v15 = vadd.f32 1.0, %v1656_v63 }
 0x142   : > { %v1660_v13 = vpop.eup %1659  ;;  %1138 = vst [vmem:[%s2043_s10 + $0x60] sm:$0xff] %v1658_v7  ;;  %1679 = vrcp.f32 %v1049_v1  ;;  %v833_v1 = vsub.f32 0.0, %v659_v56  ;;  %v868_v25 = vsub.f32 0.0, %v800_v22 }
 0x143   : > { %v1662_v32 = vpop.eup %1661  ;;  %1170 = vst [vmem:[%s2043_s10 + $0x160] sm:$0xff] %v1660_v13  ;;  %1681 = vrcp.f32 %v1015_v15 }
 0x144   : > { %v1664_v38 = vpop.eup %1663  ;;  %1141 = vst [vmem:[%s2043_s10 + $0x78] sm:$0xff] %v1662_v32  ;;  %1683 = vpow2.f32 %v968_v47  ;;  %v918_v47 = vmul.f32 1.442695, %v830_v44  ;;  %v924_v18 = vmul.f32 1.442695, %v833_v1  ;;  %v672_v32 = vadd.f32 %v2130_v21, %v1998_v34 }
 0x145   : > { %v1666_v62 = vpop.eup %1665  ;;  %1173 = vst [vmem:[%s2043_s10 + $0x178] sm:$0xff] %v1664_v38  ;;  %1685 = vpow2.f32 %v914_v59  ;;  %v1783_v21 = vld [vmem:[%s2305_s2] ss:$0 sm:$0xff] }
 0x146   : > { %v1668_v26 = vpop.eup %1667  ;;  %1139 = vst [vmem:[%s2043_s10 + $0x68] sm:$0xff] %v1666_v62  ;;  %1687 = vpow2.f32 %v978_v16  ;;  %v792_v43 = vadd.f32 %v1783_v21, %v2142_v28  ;;  %v675_v27 = vadd.f32 %v1783_v21, %v2144_v29  ;;  %v834_v28 = vsub.f32 0.0, %v664_v23 }
 0x147   : > { %v1670_v31 = vpop.eup %1669  ;;  %1171 = vst [vmem:[%s2043_s10 + $0x168] sm:$0xff] %v1668_v26  ;;  %1689 = vpow2.f32 %v910_v19 }
 0x148   : > { %v1672_v42 = vpop.eup %1671  ;;  %1144 = vst [vmem:[%s2043_s10 + $0x90] sm:$0xff] %v1670_v31  ;;  %1691 = vpow2.f32 %v974_v30  ;;  %v863_v30 = vsub.f32 0.0, %v779_v14 }
 0x149   : > { %v1674_v41 = vpop.eup %1673  ;;  %1176 = vst [vmem:[%s2043_s10 + $0x190] sm:$0xff] %v1672_v42  ;;  %1693 = vpow2.f32 %v916_v3  ;;  %v988_v3 = vmul.f32 1.442695, %v865_v51  ;;  %v920_v42 = vmul.f32 1.442695, %v831_v20 }
 0x14a   : > { %v1676_v48 = vpop.eup %1675  ;;  %1142 = vst [vmem:[%s2043_s10 + $0x80] sm:$0xff] %v1674_v41  ;;  %1695 = vpow2.f32 %v980_v36  ;;  %v836_v36 = vsub.f32 0.0, %v672_v32  ;;  %v984_v29 = vmul.f32 1.442695, %v863_v30  ;;  %v866_v41 = vsub.f32 0.0, %v792_v43 }
 0x14b   : > { %v1678_v50 = vpop.eup %1677  ;;  %1174 = vst [vmem:[%s2043_s10 + $0x180] sm:$0xff] %v1676_v48  ;;  %1697 = vpow2.f32 %v912_v53  ;;  %v803_v53 = vadd.f32 %v1783_v21, %v2149_v37 }
 0x14c   : > { %v1680_v54 = vpop.eup %1679  ;;  %1145 = vst [vmem:[%s2043_s10 + $0x98] sm:$0xff] %v1678_v50  ;;  %1699 = vpow2.f32 %v976_v33  ;;  %v667_v33 = vadd.f32 %v1783_v21, %v2151_v40  ;;  %v930_v37 = vmul.f32 1.442695, %v836_v36 }
 0x14d   : > { %v1682_v5 = vpop.eup %1681  ;;  %1177 = vst [vmem:[%s2043_s10 + $0x198] sm:$0xff] %v1680_v54  ;;  %1701 = vpow2.f32 %v922_v0  ;;  %v795_v0 = vadd.f32 %v1783_v21, %v2154_v46  ;;  %v869_v40 = vsub.f32 0.0, %v803_v53 }
 0x14e   : > { %v1684_v55 = vpop.eup %1683  ;;  %1143 = vst [vmem:[%s2043_s10 + $0x88] sm:$0xff] %v1682_v5  ;;  %1703 = vpow2.f32 %v986_v4  ;;  %v837_v4 = vsub.f32 0.0, %v675_v27  ;;  %v835_v5 = vsub.f32 0.0, %v667_v33 }
 0x14f   : > { %v1686_v9 = vpop.eup %1685  ;;  %v1047_v58 = vadd.f32 1.0, %v1684_v55  ;;  %1705 = vpow2.f32 %v918_v47  ;;  %v994_v47 = vmul.f32 1.442695, %v868_v25  ;;  %v990_v55 = vmul.f32 1.442695, %v866_v41 }
 0x150   : > { %v1688_v59 = vpop.eup %1687  ;;  %v1020_v6 = vadd.f32 1.0, %v1686_v9  ;;  %1707 = vpow2.f32 %v982_v49  ;;  %v926_v49 = vmul.f32 1.442695, %v834_v28  ;;  %v867_v56 = vsub.f32 0.0, %v795_v0 }
 0x151   : > { %v1690_v60 = vpop.eup %1689  ;;  %1709 = vrcp.f32 %v1047_v58  ;;  %v1052_v10 = vadd.f32 1.0, %v1688_v59  ;;  %v932_v58 = vmul.f32 1.442695, %v837_v4 }
 0x152   : > { %v1692_v8 = vpop.eup %1691  ;;  %1711 = vrcp.f32 %v1020_v6  ;;  %v1018_v63 = vadd.f32 1.0, %v1690_v60  ;;  %v996_v6 = vmul.f32 1.442695, %v869_v40 }
 0x153   : > { %v1694_v11 = vpop.eup %1693  ;;  %1713 = vrcp.f32 %v1052_v10  ;;  %v1050_v2 = vadd.f32 1.0, %v1692_v8  ;;  %v928_v10 = vmul.f32 1.442695, %v835_v5  ;;  %v992_v8 = vmul.f32 1.442695, %v867_v56 }
 0x154   : > { %v1696_v7 = vpop.eup %1695  ;;  %1715 = vrcp.f32 %v1018_v63  ;;  %v1021_v15 = vadd.f32 1.0, %v1694_v11 }
 0x155   : > { %v1698_v12 = vpop.eup %1697  ;;  %1717 = vrcp.f32 %v1050_v2  ;;  %v1053_v13 = vadd.f32 1.0, %v1696_v7 }
 0x156   : > { %v1700_v16 = vpop.eup %1699  ;;  %1719 = vrcp.f32 %v1021_v15  ;;  %v1019_v17 = vadd.f32 1.0, %v1698_v12 }
 0x157   : > { %v1702_v19 = vpop.eup %1701  ;;  %1721 = vrcp.f32 %v1053_v13  ;;  %v1051_v52 = vadd.f32 1.0, %v1700_v16 }
 0x158   : > { %v1704_v38 = vpop.eup %1703  ;;  %1723 = vrcp.f32 %v1019_v17  ;;  %v1024_v57 = vadd.f32 1.0, %v1702_v19 }
 0x159   : > { %v1706_v24 = vpop.eup %1705  ;;  %1725 = vrcp.f32 %v1051_v52  ;;  %v1056_v62 = vadd.f32 1.0, %v1704_v38 }
 0x15a   : > { %v1708_v26 = vpop.eup %1707  ;;  %1727 = vrcp.f32 %v1024_v57  ;;  %v1022_v39 = vadd.f32 1.0, %v1706_v24 }
 0x15b   : > { %v1710_v31 = vpop.eup %1709  ;;  %1729 = vrcp.f32 %v1056_v62  ;;  %v1054_v34 = vadd.f32 1.0, %v1708_v26 }
 0x15c   : > { %v1712_v44 = vpop.eup %1711  ;;  %1175 = vst [vmem:[%s2043_s10 + $0x188] sm:$0xff] %v1710_v31  ;;  %1731 = vrcp.f32 %v1022_v39 }
 0x15d   : > { %v1714_v35 = vpop.eup %1713  ;;  %1148 = vst [vmem:[%s2043_s10 + $0xb0] sm:$0xff] %v1712_v44  ;;  %1733 = vrcp.f32 %v1054_v34 }
 0x15e   : > { %v1716_v48 = vpop.eup %1715  ;;  %1180 = vst [vmem:[%s2043_s10 + $0x1b0] sm:$0xff] %v1714_v35  ;;  %1735 = vpow2.f32 %v924_v18 }
 0x15f   : > { %v1718_v50 = vpop.eup %1717  ;;  %1146 = vst [vmem:[%s2043_s10 + $0xa0] sm:$0xff] %v1716_v48  ;;  %1737 = vpow2.f32 %v988_v3 }
 0x160   : > { %v1720_v54 = vpop.eup %1719  ;;  %1178 = vst [vmem:[%s2043_s10 + $0x1a0] sm:$0xff] %v1718_v50  ;;  %1739 = vpow2.f32 %v920_v42 }
 0x161   : > { %v1722_v46 = vpop.eup %1721  ;;  %1149 = vst [vmem:[%s2043_s10 + $0xb8] sm:$0xff] %v1720_v54  ;;  %1741 = vpow2.f32 %v984_v29 }
 0x162   : > { %v1724_v9 = vpop.eup %1723  ;;  %1181 = vst [vmem:[%s2043_s10 + $0x1b8] sm:$0xff] %v1722_v46  ;;  %1743 = vpow2.f32 %v930_v37 }
 0x163   : > { %v1726_v59 = vpop.eup %1725  ;;  %1147 = vst [vmem:[%s2043_s10 + $0xa8] sm:$0xff] %v1724_v9  ;;  %1745 = vpow2.f32 %v994_v47 }
 0x164   : > { %v1728_v60 = vpop.eup %1727  ;;  %1179 = vst [vmem:[%s2043_s10 + $0x1a8] sm:$0xff] %v1726_v59  ;;  %1747 = vpow2.f32 %v926_v49 }
 0x165   : > { %v1730_v61 = vpop.eup %1729  ;;  %1152 = vst [vmem:[%s2043_s10 + $0xd0] sm:$0xff] %v1728_v60  ;;  %1749 = vpow2.f32 %v990_v55 }
 0x166   : > { %v1732_v63 = vpop.eup %1731  ;;  %1184 = vst [vmem:[%s2043_s10 + $0x1d0] sm:$0xff] %v1730_v61  ;;  %1751 = vpow2.f32 %v932_v58 }
 0x167   : > { %v1734_v1 = vpop.eup %1733  ;;  %1150 = vst [vmem:[%s2043_s10 + $0xc0] sm:$0xff] %v1732_v63  ;;  %1753 = vpow2.f32 %v996_v6 }
 0x168   : > { %v1736_v11 = vpop.eup %1735  ;;  %1182 = vst [vmem:[%s2043_s10 + $0x1c0] sm:$0xff] %v1734_v1  ;;  %1755 = vpow2.f32 %v928_v10 }
 0x169   : > { %v1738_v2 = vpop.eup %1737  ;;  %v1025_v45 = vadd.f32 1.0, %v1736_v11  ;;  %1757 = vpow2.f32 %v992_v8 }
 0x16a   : > { %v1740_v7 = vpop.eup %1739  ;;  %v1057_v15 = vadd.f32 1.0, %v1738_v2 }
 0x16b   : > { %v1742_v14 = vpop.eup %1741  ;;  %1759 = vrcp.f32 %v1025_v45  ;;  %v1023_v12 = vadd.f32 1.0, %v1740_v7 }
 0x16c   : > { %v1744_v13 = vpop.eup %1743  ;;  %1761 = vrcp.f32 %v1057_v15  ;;  %v1055_v51 = vadd.f32 1.0, %v1742_v14 }
 0x16d   : > { %v1746_v16 = vpop.eup %1745  ;;  %1763 = vrcp.f32 %v1023_v12  ;;  %v1028_v17 = vadd.f32 1.0, %v1744_v13 }
 0x16e   : > { %v1748_v18 = vpop.eup %1747  ;;  %1765 = vrcp.f32 %v1055_v51  ;;  %v1060_v32 = vadd.f32 1.0, %v1746_v16 }
 0x16f   : > { %v1750_v19 = vpop.eup %1749  ;;  %1767 = vrcp.f32 %v1028_v17  ;;  %v1026_v52 = vadd.f32 1.0, %v1748_v18 }
 0x170   : > { %v1752_v20 = vpop.eup %1751  ;;  %1769 = vrcp.f32 %v1060_v32  ;;  %v1058_v22 = vadd.f32 1.0, %v1750_v19 }
 0x171   : > { %v1754_v38 = vpop.eup %1753  ;;  %1771 = vrcp.f32 %v1026_v52  ;;  %v1029_v57 = vadd.f32 1.0, %v1752_v20 }
 0x172   : > { %v1756_v30 = vpop.eup %1755  ;;  %1773 = vrcp.f32 %v1058_v22  ;;  %v1061_v23 = vadd.f32 1.0, %v1754_v38 }
 0x173   : > { %v1758_v24 = vpop.eup %1757  ;;  %1775 = vrcp.f32 %v1029_v57  ;;  %v1027_v62 = vadd.f32 1.0, %v1756_v30 }
 0x174   : > { %1777 = vrcp.f32 %v1061_v23  ;;  %v1059_v3 = vadd.f32 1.0, %v1758_v24 }
 0x175   : > { %v1760_v21 = vpop.eup %1759  ;;  %1779 = vrcp.f32 %v1027_v62 }
 0x176   : > { %v1762_v43 = vpop.eup %1761  ;;  %1153 = vst [vmem:[%s2043_s10 + $0xd8] sm:$0xff] %v1760_v21  ;;  %1781 = vrcp.f32 %v1059_v3 }
 0x177   : > { %v1764_v26 = vpop.eup %1763  ;;  %1185 = vst [vmem:[%s2043_s10 + $0x1d8] sm:$0xff] %v1762_v43 }
 0x178   : > { %v1766_v39 = vpop.eup %1765  ;;  %1151 = vst [vmem:[%s2043_s10 + $0xc8] sm:$0xff] %v1764_v26 }
 0x179   : > { %v1768_v36 = vpop.eup %1767  ;;  %1183 = vst [vmem:[%s2043_s10 + $0x1c8] sm:$0xff] %v1766_v39 }
 0x17a   : > { %v1770_v27 = vpop.eup %1769  ;;  %1156 = vst [vmem:[%s2043_s10 + $0xf0] sm:$0xff] %v1768_v36 }
 0x17b   : > { %v1772_v31 = vpop.eup %1771  ;;  %1188 = vst [vmem:[%s2043_s10 + $0x1f0] sm:$0xff] %v1770_v27 }
 0x17c   : > { %v1774_v34 = vpop.eup %1773  ;;  %1154 = vst [vmem:[%s2043_s10 + $0xe0] sm:$0xff] %v1772_v31 }
 0x17d   : > { %v1776_v25 = vpop.eup %1775  ;;  %1186 = vst [vmem:[%s2043_s10 + $0x1e0] sm:$0xff] %v1774_v34 }
 0x17e   : > { %v1778_v53 = vpop.eup %1777  ;;  %1157 = vst [vmem:[%s2043_s10 + $0xf8] sm:$0xff] %v1776_v25 }
 0x17f   : > { %v1780_v44 = vpop.eup %1779  ;;  %1189 = vst [vmem:[%s2043_s10 + $0x1f8] sm:$0xff] %v1778_v53 }
 0x180   : > { %v1782_v42 = vpop.eup %1781  ;;  %1155 = vst [vmem:[%s2043_s10 + $0xe8] sm:$0xff] %v1780_v44 }
 0x181   : > { %1187 = vst [vmem:[%s2043_s10 + $0x1e8] sm:$0xff] %v1782_v42 }
 0x182   : > { %1797 = shalt.err (!%p1794_p3)
}
 0x183   : > { %s1798_s4 = scalar_lea.hbm %s2253_s26, 8192  ;;  %s1802_s7 = scalar_lea.hbm %s2306_s3, 16384 }
 0x184   : > { %p1799_p4 = scmp.ne.s32.totalorder %s2253_s26, %s1798_s4  ;;  %p1803_p9 = scmp.lt.u32.totalorder %s2253_s26, %s2306_s3 }
 0x185   : > { %p1804_p10 = scmp.lt.u32.totalorder %s1802_s7, %s1798_s4  ;;  %p1806_p12 = scmp.lt.u32.totalorder %s1798_s4, %s2253_s26 }
 0x186   : > { %p1800_p7 = pnand %p1799_p4, %p1909_p5 }
 0x187   : > { %p1805_p11 = por %p1804_p10, %p1803_p9 }
 0x188   : > { %p1801_p8 = pneg %p1800_p7 }
 0x189   : > { %p1807_p13 = por %p1806_p12, %p1805_p11 }
 0x18b   : > { %p1808_p0 = pnand %p1807_p13, %p1801_p8 }
 0x18d   : > { %1811 = shalt.err (!%p1808_p0)
}
 0x18e   : > { %s1849_s10 = smov 128   ;;  %s1850_s11 = smov 8  }
 0x18f   : > { %1452 = dma.vmem_to_hbm [thread:$0]  (%p1909_p5), %s2255_s20, 8192, %s2253_s26, %s2262_s16, %s1849_s10, %s1849_s10, %s1850_s11  }
 0x190 PF: > { %p1458_p1 = scmp.ge.s32.totalorder %s1846_s15, 2  ;;  %s1219_s17 = sand.u32 1, %s1834_s12  }
 0x191   : > { %s1220_s19 = scalar_lea.sflag [#allocation3], %s1219_s17 }
 0x192   : > { %p1455_p2 = pnand %p1458_p1, %p1913_p6 }
 0x194   : > { %1829 = dma.done.wait (!%p1455_p2), %s1220_s19, 8192  }
 0x195   : > { %1831 = vsyncadd (!%p1455_p2), %s1220_s19, 4294959104  ;;  %p13_p3 = scmp.ge.s32.totalorder %s1896_s18, 4   ;;  %s2309_s12 = smov %s1838_s13 }
 0x196   : > { %s2310_s13 = smov %s1842_s14  ;;  %s2311_s14 = smov %s1907_s21 }
 0x197   : > { %s2312_s15 = smov %s1896_s18  ;;  %15 = sbr.rel (!%p13_p3) target bundleno = 3 (0x3), region = 67 }
 0x19e   :  { %1225 = vsyncpa [#allocation3], 1 }
 0x19f   :  { %1227 = vsyncpa [#allocation3 + $0x1], 1 }

</bundles_post_ra>
